<compile_context>
chip_gen: v5e
topology: v5e:2x2
jax: 0.10.0
libtpu: 0.0.40
codegen_flags: <defaults>
</compile_context>

<pallas_src>
import functools

import jax
import jax.numpy as jnp
import numpy as np
from jax.experimental import pallas as pl
from jax.experimental.pallas import tpu as pltpu


def _shift_kernel(x_ref, o_ref, *, plan, size):
    """One batch block.  x_ref / o_ref: (Bt, C, S*S), S == size.

    plan: static tuple of (chan_start, chan_count, dy, dx) per shift group.
    Semantics on the flat minor dim k = i*S + j:
        out_flat[k] = x_flat[k + dy*S + dx]   where i+dy and j+dx stay in
        [0, S), and 0 elsewhere.
    Implemented as a cyclic lane roll + full-width validity mask so every
    group is exactly one dense load, one XLU roll, one dense store.
    """
    S = size
    HW = S * S
    pow2 = (S & (S - 1)) == 0

    # One validity mask per unique nonzero (dy, dx), shape (1, 1, HW).
    nonzero = [(dy, dx) for _, _, dy, dx in plan if (dy, dx) != (0, 0)]
    masks = {}
    if nonzero:
        k = jax.lax.broadcasted_iota(jnp.int32, (1, 1, HW), 2)
        col = None
        if any(dx != 0 for _, dx in nonzero):
            if pow2:
                col = k & (S - 1)          # col = k % S without vector idiv
            else:
                # TODO(synk): non-power-of-two spatial sizes rely on Mosaic's
                # vector integer remainder lowering; demo shapes are pow2.
                col = k % S
        for dy, dx in nonzero:
            if (dy, dx) in masks:
                continue
            conds = []
            if dy > 0:
                conds.append(k < (S - dy) * S)       # row + dy < S
            elif dy < 0:
                conds.append(k >= (-dy) * S)         # row + dy >= 0
            if dx > 0:
                conds.append(col < S - dx)           # col + dx < S
            elif dx < 0:
                conds.append(col >= -dx)             # col + dx >= 0
            ok = conds[0]
            for extra in conds[1:]:
                ok = ok & extra
            masks[(dy, dx)] = ok

    for start, cnt, dy, dx in plan:
        ch = slice(start, start + cnt)

        if dy == 0 and dx == 0:
            # Identity group (e.g. the remainder group): plain dense copy.
            o_ref[:, ch, :] = x_ref[:, ch, :]
            continue

        s = dy * S + dx                              # static flat shift
        # rolled[k] = x[(k + s) mod HW]; mask zeroes every wrapped/OOB k.
        rolled = pltpu.roll(x_ref[:, ch, :], shift=(-s) % HW, axis=2)
        o_ref[:, ch, :] = jnp.where(masks[(dy, dx)], rolled, 0)


def make_shifts(inplanes, ksize=3, dilation=1, seed=0):
    """Deterministic re-creation of the module's __init__ shift parameters."""
    groups = inplanes // ksize ** 2
    key = jax.random.PRNGKey(seed)
    shifts = []
    for _ in range(groups):
        key, sub = jax.random.split(key)
        dxdy = jax.random.randint(sub, (2,), -(ksize - 1) // 2, (ksize + 1) // 2)
        shifts.append(np.asarray(dxdy, np.int32) * dilation)
    shifts.append(np.zeros((2,), np.int32))   # final (remainder) group: no shift
    return shifts


def shift_forward(x, shifts, ksize=3, dilation=1, max_block_bytes=6 * 1024 * 1024):
    b, c, d2, d3 = x.shape
    assert d2 == d3, "Shift assumes square spatial dims (as the reference does)"
    S = d2
    HW = S * S
    dk2 = ksize ** 2
    groups = c // dk2
    pad = dilation * (ksize - 1) // 2

    # Static per-group plan: (channel_start, channel_count, dy, dx).
    # dy shifts dim2 (rows), dx shifts dim3 (cols) -- matches the reference.
    raw = []
    for i in range(groups + 1):
        start, end = i * dk2, min(c, (i + 1) * dk2)
        if start >= end:
            continue
        dx, dy = int(shifts[i][0]), int(shifts[i][1])
        # Flat-shift trick requires the shift to stay strictly inside one image.
        assert abs(dy) < S and abs(dx) < S, "shift magnitude must be < spatial size"
        raw.append((start, end - start, dy, dx))

    # Coalesce adjacent groups that share the same (dy, dx) shift.
    plan = []
    for entry in raw:
        if plan and (plan[-1][2], plan[-1][3]) == (entry[2], entry[3]) \
                and plan[-1][0] + plan[-1][1] == entry[0]:
            p = plan.pop()
            plan.append((p[0], p[1] + entry[1], p[2], p[3]))
        else:
            plan.append(entry)
    plan = tuple(plan)

    # Batch tiling: large blocks to amortize ~0.35us/step overhead, but keep
    # >= 2 "parallel" grid steps when possible (v7x has 2 TensorCores), and
    # cap the per-block footprint (v7x VMEM is 64 MiB physical).
    itemsize = x.dtype.itemsize
    per_batch = c * HW * itemsize
    bt = max(1, min(b, max_block_bytes // max(per_batch, 1)))
    if b >= 2:
        bt = min(bt, max(1, b // 2))
    while b % bt:
        bt -= 1
    grid = (b // bt,)

    block_bytes = bt * per_batch
    # 2x input + 2x output double-buffered blocks, plus generous headroom.
    vmem_limit = int(min(64 * 1024 * 1024, max(32 * 1024 * 1024, 6 * block_bytes)))

    kernel = functools.partial(_shift_kernel, plan=plan, size=S)

    x_flat = x.reshape(b, c, HW)     # free row-major merge of the minor dims

    out_flat = pl.pallas_call(
        kernel,
        out_shape=jax.ShapeDtypeStruct((b, c, HW), x.dtype),
        grid=grid,
        in_specs=[pl.BlockSpec((bt, c, HW), lambda i: (i, 0, 0))],
        out_specs=pl.BlockSpec((bt, c, HW), lambda i: (i, 0, 0)),
        compiler_params=pltpu.CompilerParams(
            dimension_semantics=("parallel",),
            vmem_limit_bytes=vmem_limit),
        cost_estimate=pl.CostEstimate(
            flops=0, transcendentals=0,
            bytes_accessed=2 * x.size * x.dtype.itemsize),
    )(x_flat)

    return out_flat.reshape(b, c, S, S)


def shift_reference(x, shifts, ksize=3, dilation=1):
    """Pure-JAX transcription of the PyTorch forward for verification."""
    b, c, w, h = x.shape
    dk2 = ksize ** 2
    pad = dilation * (ksize - 1) // 2
    groups = c // dk2
    xp = jnp.pad(x, ((0, 0), (0, 0), (pad, pad), (pad, pad)))
    acc = []
    for i in range(groups + 1):
        start, end = i * dk2, min(c, (i + 1) * dk2)
        if start >= end:
            continue
        dx, dy = int(shifts[i][0]), int(shifts[i][1])
        x1, y1 = pad + dx, pad + dy
        acc.append(xp[:, start:end, y1:y1 + h, x1:x1 + w])
    return jnp.concatenate(acc, axis=1)


if __name__ == "__main__":
    B, C, H, W = 2, 20, 16, 16        # groups = 20 // 9 = 2, remainder 2 channels
    KSIZE, DILATION = 3, 1

    key = jax.random.PRNGKey(0)
    x = jax.random.normal(key, (B, C, H, W), dtype=jnp.float32)

    shifts = make_shifts(C, KSIZE, DILATION, seed=0)

    out = shift_forward(x, shifts, KSIZE, DILATION)
    out = jax.block_until_ready(out)

    ref = shift_reference(x, shifts, KSIZE, DILATION)
    np.testing.assert_allclose(np.asarray(out), np.asarray(ref), rtol=0, atol=0)

    print("KERNEL_OK")
</pallas_src>

<mosaic_0001>
module attributes {stable_mosaic.version = 11 : i64} {
  func.func @_shift_kernel(%arg0: i32, %arg1: memref<1x20x256xf32, #tpu.memory_space<vmem>>, %arg2: memref<1x20x256xf32, #tpu.memory_space<vmem>>) attributes {dimension_semantics = [#tpu.dimension_semantics<parallel>], iteration_bounds = array<i64: 2>, scalar_prefetch = 0 : i64, scratch_operands = 0 : i64, tpu.core_type = #tpu.core_type<tc>, window_params = [{transform_indices = @transform_0, window_bounds = array<i64: 1, 20, 256>}, {transform_indices = @transform_1, window_bounds = array<i64: 1, 20, 256>}]} {
    %0 = tpu.iota {dimensions = array<i32: 2>} : vector<1x1x256xi32>
    %c15_i32 = arith.constant 15 : i32
    %1 = vector.broadcast %c15_i32 : i32 to vector<1x1x256xi32>
    %2 = arith.andi %0, %1 : vector<1x1x256xi32>
    %c15_i32_0 = arith.constant 15 : i32
    %3 = vector.broadcast %c15_i32_0 : i32 to vector<1x1x256xi32>
    %4 = arith.cmpi slt, %2, %3 : vector<1x1x256xi32>
    %c16_i32 = arith.constant 16 : i32
    %5 = vector.broadcast %c16_i32 : i32 to vector<1x1x256xi32>
    %6 = arith.cmpi sge, %0, %5 : vector<1x1x256xi32>
    %c15_i32_1 = arith.constant 15 : i32
    %7 = vector.broadcast %c15_i32_1 : i32 to vector<1x1x256xi32>
    %8 = arith.cmpi slt, %2, %7 : vector<1x1x256xi32>
    %9 = arith.andi %6, %8 : vector<1x1x256xi1>
    %c0 = arith.constant 0 : index
    %c0_2 = arith.constant 0 : index
    %c0_3 = arith.constant 0 : index
    %10 = vector.load %arg1[%c0, %c0_2, %c0_3] : memref<1x20x256xf32, #tpu.memory_space<vmem>>, vector<1x9x256xf32>
    %c255_i32 = arith.constant 255 : i32
    %11 = tpu.dynamic_rotate %10 by %c255_i32 dim 2 : vector<1x9x256xf32>, i32 -> vector<1x9x256xf32>
    %c0_i32 = arith.constant 0 : i32
    %12 = arith.sitofp %c0_i32 : i32 to f32
    %13 = vector.shape_cast %4 : vector<1x1x256xi1> to vector<1x1x256xi1>
    %14 = vector.broadcast %13 : vector<1x1x256xi1> to vector<1x9x256xi1>
    %15 = vector.broadcast %12 : f32 to vector<1x9x256xf32>
    %16 = arith.select %14, %11, %15 : vector<1x9x256xi1>, vector<1x9x256xf32>
    %c0_4 = arith.constant 0 : index
    %c0_5 = arith.constant 0 : index
    %c0_6 = arith.constant 0 : index
    %17 = vector.load %arg2[%c0_4, %c0_5, %c0_6] : memref<1x20x256xf32, #tpu.memory_space<vmem>>, vector<1x9x256xf32>
    tpu.vector_store %arg2[%c0_4, %c0_5, %c0_6], %16 {strides = array<i32>} : memref<1x20x256xf32, #tpu.memory_space<vmem>>, vector<1x9x256xf32>,
    %c0_7 = arith.constant 0 : index
    %c9 = arith.constant 9 : index
    %c0_8 = arith.constant 0 : index
    %18 = vector.load %arg1[%c0_7, %c9, %c0_8] : memref<1x20x256xf32, #tpu.memory_space<vmem>>, vector<1x9x256xf32>
    %c15_i32_9 = arith.constant 15 : i32
    %19 = tpu.dynamic_rotate %18 by %c15_i32_9 dim 2 : vector<1x9x256xf32>, i32 -> vector<1x9x256xf32>
    %c0_i32_10 = arith.constant 0 : i32
    %20 = arith.sitofp %c0_i32_10 : i32 to f32
    %21 = vector.shape_cast %9 : vector<1x1x256xi1> to vector<1x1x256xi1>
    %22 = vector.broadcast %21 : vector<1x1x256xi1> to vector<1x9x256xi1>
    %23 = vector.broadcast %20 : f32 to vector<1x9x256xf32>
    %24 = arith.select %22, %19, %23 : vector<1x9x256xi1>, vector<1x9x256xf32>
    %c0_11 = arith.constant 0 : index
    %c9_12 = arith.constant 9 : index
    %c0_13 = arith.constant 0 : index
    %25 = vector.load %arg2[%c0_11, %c9_12, %c0_13] : memref<1x20x256xf32, #tpu.memory_space<vmem>>, vector<1x9x256xf32>
    tpu.vector_store %arg2[%c0_11, %c9_12, %c0_13], %24 {strides = array<i32>} : memref<1x20x256xf32, #tpu.memory_space<vmem>>, vector<1x9x256xf32>,
    %c0_14 = arith.constant 0 : index
    %c18 = arith.constant 18 : index
    %c0_15 = arith.constant 0 : index
    %26 = vector.load %arg1[%c0_14, %c18, %c0_15] : memref<1x20x256xf32, #tpu.memory_space<vmem>>, vector<1x2x256xf32>
    %c0_16 = arith.constant 0 : index
    %c18_17 = arith.constant 18 : index
    %c0_18 = arith.constant 0 : index
    %27 = vector.load %arg2[%c0_16, %c18_17, %c0_18] : memref<1x20x256xf32, #tpu.memory_space<vmem>>, vector<1x2x256xf32>
    tpu.vector_store %arg2[%c0_16, %c18_17, %c0_18], %26 {strides = array<i32>} : memref<1x20x256xf32, #tpu.memory_space<vmem>>, vector<1x2x256xf32>,
    return
  }
  func.func @transform_0(%arg0: i32) -> (i32, i32, i32) {
    %c0_i32 = arith.constant 0 : i32
    %c0_i32_0 = arith.constant 0 : i32
    %c0_i32_1 = arith.constant 0 : i32
    return %arg0, %c0_i32, %c0_i32_0 : i32, i32, i32
  }
  func.func @transform_1(%arg0: i32) -> (i32, i32, i32) {
    %c0_i32 = arith.constant 0 : i32
    %c0_i32_0 = arith.constant 0 : i32
    %c0_i32_1 = arith.constant 0 : i32
    return %arg0, %c0_i32, %c0_i32_0 : i32, i32, i32
  }
}

</mosaic_0001>

<bundles_post_ra>
// kernel: tpu_custom_call.1
= control target key start
LH: loop header
LB: loop body
LE: loop exit
PB: predicated region body
PF: predicated region fallthrough
CT: control target
= control target key end

     0   :  { %s315_s6 = smov 0   ;;  %s366_s0 = inlined_call_operand.vmem [shape: f32[2,20,256], index: 0, kind: input, shape index: {}]   ;;  %s367_s1 = inlined_call_operand.vmem [shape: f32[2,20,256], index: 1, kind: output, shape index: {}]  }
   0x1 LB: > { %s275_s7 = sadd.s32 4294967295, %s301_s6   ;;  %p279_p0 = scmp.ge.s32.totalorder %s301_s6, 1  ;;  %s301_s6 = sphi %s315_s6, %s11_s6  }
   0x2   : > { %p87_p1 = scmp.lt.s32.totalorder %s301_s6, 3 }
   0x4   : > { %p88_p2 = pnand %p279_p0, %p87_p1 }
   0x5   : > { %p107_p3 = scmp.lt.s32.totalorder (!%p88_p2), %s275_s7, 1  ;;  %s303_s15 = smov (!%p88_p2), 15  }
   0x6   : > { %91 = sbr.rel (%p88_p2) target bundleno = 155 (0x9b), region = 24  ;;  %s304_s16 = smov (!%p88_p2), 127  }
   0xb   : > { %s373_s7 = smov (!%p107_p3, %s275_s7), 1  ;;  %vm165_vm0 = vcmask 1046528   ;;  %v117_v16 = vlaneseq  ;;  %vm201_vm6 = vcmask 1040384  }
   0xc   : > { %s284_s8 = smul.u32 48, %s373_s7 }
   0xd   : > { %v118_v17 = vand.u32 127, %v117_v16 }
   0xe   : > { %s111_s11 = scalar_lea.vmem %s366_s0, %s284_s8  ;;  %s329_s14 = scalar_lea.vmem %s367_s1, %s284_s8 }
   0xf   : > { %v160_v0 = vld [vmem:[%s111_s11 + $0x28] sm:$0x3]  ;;  %v216_v1 = vld [vmem:[%s111_s11 + $0x20] sm:$0xc]  ;;  %v217_v2 = vld [vmem:[%s111_s11 + $0x28] sm:$0xc] }
  0x10   : > { %v170_v3 = vrot.slane %v160_v0, 1  ;;  %v159_v4 = vld [vmem:[%s111_s11 + $0x20] sm:$0x3]  ;;  %v158_v5 = vld [vmem:[%s111_s11 + $0x18] sm:$0xfe]  ;;  %v129_v15 = vld [vmem:[%s111_s11 + $0x8] sm:$0xff] }
  0x11   : > { %v167_v6 = vrot.slane %v159_v4, 1  ;;  %v157_v7 = vld [vmem:[%s111_s11 + $0x10] sm:$0xfe]  ;;  %v128_v8 = vld [vmem:[%s111_s11] sm:$0xff]  ;;  %218 = vst [vmem:[%s329_s14 + $0x20] sm:$0xc] %v216_v1 }
  0x12   : > { %182 = vrot.lane.b32.xlu1 %v170_v3, %s303_s15  ;;  %v169_v9 = vrot.slane %v158_v5, 1  ;;  %132 = vrot.lane.b32.xlu2 %v128_v8, %s304_s16  ;;  %219 = vst [vmem:[%s329_s14 + $0x28] sm:$0xc] %v217_v2  ;;  %v166_v10 = vrot.slane %v157_v7, 1  ;;  %v130_v13 = vld [vmem:[%s111_s11 + $0x10] sm:$0x1] }
  0x13   : > { %178 = vrot.lane.b32.xlu0 %v167_v6, %s303_s15  ;;  %v131_v14 = vld [vmem:[%s111_s11 + $0x18] sm:$0x1]  ;;  %v119_v18 = vadd.s32 128, %v118_v17  ;;  %v120_v19 = vand.u32 15, %v118_v17  ;;  %vm124_vm2 = vcmp.ge.s32.totalorder %v118_v17, 16  ;;  %vm184_vm3 = vcmp.lt.s32.totalorder %v118_v17, 15 }
  0x14   : > { %v171_v11 = vsel %vm165_vm0, %v169_v9, %v170_v3  ;;  %v168_v12 = vsel %vm165_vm0, %v166_v10, %v167_v6  ;;  %vm140_vm7 = vcmp.lt.s32.totalorder %v118_v17, 127 }
  0x15   : > { %v121_v22 = vand.u32 15, %v119_v18  ;;  %vm333_vm1 = vcmp.lt.s32.totalorder %v120_v19, 15 }
  0x16   : > { %vm126_vm5 = vmand %vm124_vm2, %vm333_vm1 }
  0x17   : > { %vm337_vm4 = vcmp.lt.s32.totalorder %v121_v22, 15 }
  0x1a   : > { %180 = vrot.lane.b32.xlu1 %v171_v11, %s303_s15  ;;  %134 = vrot.lane.b32.xlu2 %v130_v13, %s304_s16 }
  0x1b   : > { %176 = vrot.lane.b32.xlu0 %v168_v12, %s303_s15 }
  0x22   : > { %138 = vrot.lane.b32.xlu1 %v131_v14, %s304_s16 }
  0x23   : > { %136 = vrot.lane.b32.xlu0 %v129_v15, %s304_s16 }
  0x6c   : > { %v133_v24 = vpop.permute.xlu2 %132 }
  0x74   : > { %v135_v42 = vpop.permute.xlu2 %134 }
  0x84   : > { %v183_v20 = vpop.permute.xlu1 %182 }
  0x85   : > { %v179_v21 = vpop.permute.xlu0 %178 }
  0x86   : > { %v186_v26 = vsel %vm184_vm3, %v179_v21, %v183_v20  ;;  %v188_v27 = vsel %vm184_vm3, %v183_v20, %v179_v21 }
  0x87   : > { %v195_v29 = vsel %vm126_vm5, %v188_v27, 0.0  ;;  %v196_v30 = vsel %vm337_vm4, %v186_v26, 0.0 }
  0x88   : > { %v204_v36 = vrot.slane %v195_v29, 7  ;;  %v206_v37 = vrot.slane %v196_v30, 7 }
  0x8c   : > { %v181_v28 = vpop.permute.xlu1 %180 }
  0x8d   : > { %v177_v31 = vpop.permute.xlu0 %176 }
  0x8e   : > { %v185_v32 = vsel %vm184_vm3, %v177_v31, %v181_v28  ;;  %v187_v33 = vsel %vm184_vm3, %v181_v28, %v177_v31 }
  0x8f   : > { %v193_v34 = vsel %vm126_vm5, %v187_v33, 0.0  ;;  %v194_v35 = vsel %vm337_vm4, %v185_v32, 0.0 }
  0x90   : > { %v202_v38 = vrot.slane %v193_v34, 7  ;;  %v203_v39 = vrot.slane %v194_v35, 7 }
  0x92   : > { %v205_v40 = vsel %vm201_vm6, %v202_v38, %v204_v36  ;;  %v207_v41 = vsel %vm201_vm6, %v203_v39, %v206_v37  ;;  %212 = vst [vmem:[%s329_s14 + $0x10] sm:$0xfe] %v202_v38 }
  0x93   : > { %213 = vst [vmem:[%s329_s14 + $0x18] sm:$0xfe] %v203_v39 }
  0x94   : > { %214 = vst [vmem:[%s329_s14 + $0x20] sm:$0x3] %v205_v40  ;;  %v139_v43 = vpop.permute.xlu1 %138 }
  0x95   : > { %215 = vst [vmem:[%s329_s14 + $0x28] sm:$0x3] %v207_v41  ;;  %v137_v44 = vpop.permute.xlu0 %136  ;;  %v142_v45 = vsel %vm140_vm7, %v135_v42, %v139_v43  ;;  %v144_v46 = vsel %vm140_vm7, %v139_v43, %v135_v42 }
  0x96   : > { %v141_v47 = vsel %vm140_vm7, %v133_v24, %v137_v44  ;;  %v143_v48 = vsel %vm140_vm7, %v137_v44, %v133_v24  ;;  %v151_v49 = vsel %vm333_vm1, %v142_v45, 0.0  ;;  %v152_v52 = vsel %vm337_vm4, %v144_v46, 0.0 }
  0x97   : > { %v149_v50 = vsel %vm333_vm1, %v141_v47, 0.0  ;;  %v150_v51 = vsel %vm337_vm4, %v143_v48, 0.0  ;;  %155 = vst [vmem:[%s329_s14 + $0x10] sm:$0x1] %v151_v49 }
  0x98   : > { %153 = vst [vmem:[%s329_s14] sm:$0xff] %v149_v50 }
  0x99   : > { %154 = vst [vmem:[%s329_s14 + $0x8] sm:$0xff] %v150_v51 }
  0x9a   : > { %156 = vst [vmem:[%s329_s14 + $0x18] sm:$0x1] %v152_v52 }
  0x9b PF: > { %s11_s6 = sadd.s32 1, %s301_s6  }
  0x9c   : > { %p8_p4 = scmp.ge.s32.totalorder %s11_s6, 4  }
  0x9e   :  { %10 = sbr.rel (!%p8_p4) target bundleno = 1 (0x1), region = 54 }

</bundles_post_ra>
